<compile_context>
chip_gen: v7x
topology: tpu7x:2x2x1
jax: 0.10.0
libtpu: 0.0.40
codegen_flags: <defaults>
</compile_context>

<pallas_src>
import functools

import jax
import jax.numpy as jnp
from jax import lax
from jax.experimental import pallas as pl
from jax.experimental.pallas import tpu as pltpu

_LANE = 128
_SUBLANE = 8
_TARGET_TILE_BYTES = 4 * 1024 * 1024   # per input per pipeline buffer


def _round_up(x, m):
    return (x + m - 1) // m * m


def _default_num_parallel():
    """2 on 2-TensorCore chips (v7x), 1 on single-TC chips (v5e/v6e)."""
    try:
        dev = jax.devices()[0]
        if dev.platform != "tpu":
            return 1
        kind = str(getattr(dev, "device_kind", "")).lower()
        if "v7" in kind:
            return 2
        nc = getattr(dev, "num_cores", None)
        if isinstance(nc, int) and nc > 0:
            return min(nc, 2)
    except Exception:
        pass
    return 1


def _rmsle_partial_kernel(pred_ref, target_ref, out_ref, *,
                          valid_rows, tile_rows, tiles_per_core,
                          mask_from_tile):
    i = pl.program_id(1)                  # row-tile index within the shard

    @pl.when(i == 0)
    def _():
        out_ref[...] = jnp.zeros_like(out_ref)

    # Cast narrow inputs to f32 inside the kernel (halves HBM bytes for bf16).
    p = pred_ref[...].astype(jnp.float32)
    t = target_ref[...].astype(jnp.float32)
    # One EUP log push per element (divide -> reciprocal + refinement) instead
    # of two log1p pushes; keeps the kernel HBM-bound on v7x / bf16 inputs.
    d = jnp.log((1.0 + p) / (1.0 + t))
    sq = d * d

    def accumulate(vals):
        # Vreg-shaped (8,128) accumulation: pure full-vreg VPU adds in the hot
        # loop; no per-step cross-lane XLU reduce.
        out_ref[...] += vals.reshape(tile_rows // _SUBLANE, _SUBLANE,
                                     _LANE).sum(axis=0)

    if mask_from_tile is None:
        # No ragged tiles and no out-of-range duplicates anywhere: pure
        # unmasked path for every grid step.
        accumulate(sq)
    else:
        c = pl.program_id(0)
        logical_tile = c * tiles_per_core + i

        @pl.when(logical_tile < mask_from_tile)
        def _():
            accumulate(sq)

        @pl.when(logical_tile >= mask_from_tile)
        def _():
            # Select-based mask (NOT multiplicative) so NaN/Inf from garbage
            # rows of a partial edge block / clamped duplicate tile never
            # reach the sum.
            row_start = logical_tile * tile_rows
            row_ids = row_start + lax.broadcasted_iota(
                jnp.int32, (tile_rows, 1), 0)
            accumulate(jnp.where(row_ids < valid_rows, sq, 0.0))


def rmsle_loss(pred, target, *, num_parallel=None,
               target_tile_bytes=_TARGET_TILE_BYTES):
    """RMSLE loss. pred/target: matching shapes, any float dtype."""
    assert pred.shape == target.shape
    n = pred.size
    assert n > 0

    if num_parallel is None:
        num_parallel = _default_num_parallel()
    num_parallel = max(1, int(num_parallel))

    flat_p = pred.reshape(-1)
    flat_t = target.reshape(-1)

    # Ragged element count: sum the (< 128-element) tail with plain JAX in the
    # wrapper instead of jnp.pad-ing (and copying) both full arrays.
    rem = n % _LANE
    tail_sum = jnp.float32(0.0)
    if rem != 0:
        pt = flat_p[n - rem:].astype(jnp.float32)
        tt = flat_t[n - rem:].astype(jnp.float32)
        dt = jnp.log((1.0 + pt) / (1.0 + tt))
        tail_sum = jnp.sum(dt * dt)
        flat_p = flat_p[: n - rem]
        flat_t = flat_t[: n - rem]

    rows = (n - rem) // _LANE
    if rows < _SUBLANE:
        # Tiny input (< 1024 bulk elements): plain JAX is already optimal.
        pa = pred.reshape(-1).astype(jnp.float32)
        ta = target.reshape(-1).astype(jnp.float32)
        da = jnp.log((1.0 + pa) / (1.0 + ta))
        return jnp.sqrt(jnp.sum(da * da) / jnp.float32(n))

    p2 = flat_p.reshape(rows, _LANE)   # free when n % 128 == 0 (contiguous)
    t2 = flat_t.reshape(rows, _LANE)

    # Dtype-aware tile sizing: ~4 MiB per input per buffer (f32 -> 8192 rows,
    # bf16 -> 16384 rows).  2 inputs x 2 buffers x 4 MiB = 16 MiB, safely
    # inside the 32 MiB scoped VMEM on v6e/v7x (and raised below for v5e).
    itemsize = max(jnp.dtype(pred.dtype).itemsize,
                   jnp.dtype(target.dtype).itemsize)
    tile_rows = max(_SUBLANE,
                    (target_tile_bytes // (_LANE * itemsize))
                    // _SUBLANE * _SUBLANE)
    tile_rows = min(tile_rows, rows // _SUBLANE * _SUBLANE)

    n_tiles = pl.cdiv(rows, tile_rows)
    if num_parallel > 1 and n_tiles % num_parallel != 0:
        # Rebalance so the tile count splits evenly across TensorCores and no
        # core re-DMAs a fully-masked duplicate tile.
        n_tiles_bal = _round_up(n_tiles, num_parallel)
        tile_rows = max(_SUBLANE,
                        min(_round_up(pl.cdiv(rows, n_tiles_bal), _SUBLANE),
                            rows // _SUBLANE * _SUBLANE))
        n_tiles = pl.cdiv(rows, tile_rows)
    tiles_per_core = pl.cdiv(n_tiles, num_parallel)

    # Which tiles need masking?  Ragged last tile (rows % tile_rows != 0) and
    # any out-of-range duplicate tiles from an uneven core split.
    ragged_rows = (rows % tile_rows) != 0
    total_logical_tiles = num_parallel * tiles_per_core
    if ragged_rows or total_logical_tiles > n_tiles:
        mask_from_tile = (n_tiles - 1) if ragged_rows else n_tiles
    else:
        mask_from_tile = None

    def in_map(c, i):
        # Clamp so every DMA'd block starts inside the array; logically
        # out-of-range tiles are fully masked inside the kernel.
        return (jnp.minimum(c * tiles_per_core + i, n_tiles - 1), 0)

    # VMEM budget derived from the actual buffer math (+ margin), kept at or
    # below the 32 MiB scoped limit so the same code is safe on v7x's 64 MiB.
    tile_bytes = tile_rows * _LANE * itemsize
    vmem_needed = 2 * 2 * tile_bytes \
        + num_parallel * _SUBLANE * _LANE * 4 + (2 << 20)
    vmem_limit = int(min(max(vmem_needed, 8 << 20), 32 << 20))

    partials = pl.pallas_call(
        functools.partial(_rmsle_partial_kernel,
                          valid_rows=rows,
                          tile_rows=tile_rows,
                          tiles_per_core=tiles_per_core,
                          mask_from_tile=mask_from_tile),
        out_shape=jax.ShapeDtypeStruct((num_parallel, _SUBLANE, _LANE),
                                       jnp.float32),
        grid_spec=pltpu.PrefetchScalarGridSpec(
            num_scalar_prefetch=0,
            grid=(num_parallel, tiles_per_core),
            in_specs=[
                pl.BlockSpec((tile_rows, _LANE), in_map),
                pl.BlockSpec((tile_rows, _LANE), in_map),
            ],
            # Same output block for every i -> VMEM-resident accumulator; no
            # scratch allocation and no epilogue copy.
            out_specs=pl.BlockSpec((None, _SUBLANE, _LANE),
                                   lambda c, i: (c, 0, 0)),
        ),
        compiler_params=pltpu.CompilerParams(
            dimension_semantics=("parallel", "arbitrary"),
            vmem_limit_bytes=vmem_limit,
        ),
    )(p2, t2)

    # Tiny final combine: cross-lane reduce of the (num_parallel, 8, 128)
    # partial sums (+ ragged tail), then mean + sqrt.
    total = jnp.sum(partials) + tail_sum
    return jnp.sqrt(total / jnp.float32(n))


if __name__ == "__main__":
    key = jax.random.PRNGKey(0)
    k1, k2 = jax.random.split(key)
    # Small NCHW-like shapes; RMSLE expects non-negative inputs (e.g. counts).
    pred = jax.random.uniform(k1, (2, 4, 16, 16), dtype=jnp.float32) * 10.0
    target = jax.random.uniform(k2, (2, 4, 16, 16), dtype=jnp.float32) * 10.0

    loss = rmsle_loss(pred, target)
    jax.block_until_ready(loss)

    # Reference check in plain JAX (matches the PyTorch log(x+1) formulation).
    ref = jnp.sqrt(jnp.mean((jnp.log(pred + 1.0) - jnp.log(target + 1.0)) ** 2))
    assert jnp.allclose(loss, ref, rtol=1e-4, atol=1e-6), (loss, ref)

    print("KERNEL_OK")
</pallas_src>

<mosaic_0001>
module attributes {stable_mosaic.version = 11 : i64} {
  func.func @_rmsle_partial_kernel(%arg0: i32, %arg1: i32, %arg2: memref<16x128xf32, #tpu.memory_space<vmem>>, %arg3: memref<16x128xf32, #tpu.memory_space<vmem>>, %arg4: memref<1x8x128xf32, #tpu.memory_space<vmem>>) attributes {dimension_semantics = [#tpu.dimension_semantics<parallel>, #tpu.dimension_semantics<arbitrary>], iteration_bounds = array<i64: 1, 1>, scalar_prefetch = 0 : i64, scratch_operands = 0 : i64, tpu.core_type = #tpu.core_type<tc>, window_params = [{transform_indices = @transform_0, window_bounds = array<i64: 16, 128>}, {transform_indices = @transform_1, window_bounds = array<i64: 16, 128>}, {transform_indices = @transform_2, window_bounds = array<i64: 1, 8, 128>}]} {
    %c0_i32 = arith.constant 0 : i32
    %0 = arith.cmpi eq, %arg1, %c0_i32 : i32
    %1 = arith.extui %0 : i1 to i32
    %c0_i32_0 = arith.constant 0 : i32
    %2 = arith.cmpi ne, %1, %c0_i32_0 : i32
    scf.if %2 {
      %cst_12 = arith.constant 0.000000e+00 : f32
      %20 = vector.broadcast %cst_12 : f32 to vector<8x128xf32>
      %c0_13 = arith.constant 0 : index
      %c0_14 = arith.constant 0 : index
      %c0_15 = arith.constant 0 : index
      %21 = vector.load %arg4[%c0_13, %c0_14, %c0_15] : memref<1x8x128xf32, #tpu.memory_space<vmem>>, vector<1x8x128xf32>
      %22 = vector.shape_cast %21 : vector<1x8x128xf32> to vector<8x128xf32>
      %23 = vector.shape_cast %20 : vector<8x128xf32> to vector<1x8x128xf32>
      tpu.vector_store %arg4[%c0_13, %c0_14, %c0_15], %23 {strides = array<i32>} : memref<1x8x128xf32, #tpu.memory_space<vmem>>, vector<1x8x128xf32>,
    } else {
    }
    %c0 = arith.constant 0 : index
    %c0_1 = arith.constant 0 : index
    %3 = vector.load %arg2[%c0, %c0_1] : memref<16x128xf32, #tpu.memory_space<vmem>>, vector<16x128xf32>
    %c0_2 = arith.constant 0 : index
    %c0_3 = arith.constant 0 : index
    %4 = vector.load %arg3[%c0_2, %c0_3] : memref<16x128xf32, #tpu.memory_space<vmem>>, vector<16x128xf32>
    %cst = arith.constant 1.000000e+00 : f32
    %5 = vector.broadcast %cst : f32 to vector<16x128xf32>
    %6 = arith.addf %5, %3 : vector<16x128xf32>
    %cst_4 = arith.constant 1.000000e+00 : f32
    %7 = vector.broadcast %cst_4 : f32 to vector<16x128xf32>
    %8 = arith.addf %7, %4 : vector<16x128xf32>
    %9 = arith.divf %6, %8 : vector<16x128xf32>
    %10 = math.log %9 : vector<16x128xf32>
    %11 = arith.mulf %10, %10 : vector<16x128xf32>
    %c0_5 = arith.constant 0 : index
    %c0_6 = arith.constant 0 : index
    %c0_7 = arith.constant 0 : index
    %12 = vector.load %arg4[%c0_5, %c0_6, %c0_7] : memref<1x8x128xf32, #tpu.memory_space<vmem>>, vector<1x8x128xf32>
    %13 = vector.shape_cast %12 : vector<1x8x128xf32> to vector<8x128xf32>
    %14 = vector.shape_cast %11 : vector<16x128xf32> to vector<2x8x128xf32>
    %cst_8 = arith.constant dense<0.000000e+00> : vector<8x128xf32>
    %15 = vector.multi_reduction <add>, %14, %cst_8 [0] : vector<2x8x128xf32> to vector<8x128xf32>
    %16 = arith.addf %13, %15 : vector<8x128xf32>
    %c0_9 = arith.constant 0 : index
    %c0_10 = arith.constant 0 : index
    %c0_11 = arith.constant 0 : index
    %17 = vector.load %arg4[%c0_9, %c0_10, %c0_11] : memref<1x8x128xf32, #tpu.memory_space<vmem>>, vector<1x8x128xf32>
    %18 = vector.shape_cast %17 : vector<1x8x128xf32> to vector<8x128xf32>
    %19 = vector.shape_cast %16 : vector<8x128xf32> to vector<1x8x128xf32>
    tpu.vector_store %arg4[%c0_9, %c0_10, %c0_11], %19 {strides = array<i32>} : memref<1x8x128xf32, #tpu.memory_space<vmem>>, vector<1x8x128xf32>,
    return
  }
  func.func @transform_0(%arg0: i32, %arg1: i32) -> (i32, i32) {
    %c1_i32 = arith.constant 1 : i32
    %0 = arith.muli %arg0, %c1_i32 : i32
    %1 = arith.addi %0, %arg1 : i32
    %c0_i32 = arith.constant 0 : i32
    %2 = arith.minsi %1, %c0_i32 : i32
    %c0_i32_0 = arith.constant 0 : i32
    %c0_i32_1 = arith.constant 0 : i32
    return %2, %c0_i32_0 : i32, i32
  }
  func.func @transform_1(%arg0: i32, %arg1: i32) -> (i32, i32) {
    %c1_i32 = arith.constant 1 : i32
    %0 = arith.muli %arg0, %c1_i32 : i32
    %1 = arith.addi %0, %arg1 : i32
    %c0_i32 = arith.constant 0 : i32
    %2 = arith.minsi %1, %c0_i32 : i32
    %c0_i32_0 = arith.constant 0 : i32
    %c0_i32_1 = arith.constant 0 : i32
    return %2, %c0_i32_0 : i32, i32
  }
  func.func @transform_2(%arg0: i32, %arg1: i32) -> (i32, i32, i32) {
    %c0_i32 = arith.constant 0 : i32
    %c0_i32_0 = arith.constant 0 : i32
    %c0_i32_1 = arith.constant 0 : i32
    return %arg0, %c0_i32, %c0_i32_0 : i32, i32, i32
  }
}

</mosaic_0001>

<bundles_post_ra>
// kernel: tpu_custom_call.1
= control target key start
LH: loop header
LB: loop body
LE: loop exit
PB: predicated region body
PF: predicated region fallthrough
CT: control target
= control target key end

     0   :  { %7 = vsyncpa [#allocation3], 0  ;;  %s249_s0 = inlined_call_operand.hbm [shape: f32[16,128], index: 0, kind: input, shape index: {}]   ;;  %s250_s1 = inlined_call_operand.hbm [shape: f32[16,128], index: 1, kind: input, shape index: {}]   ;;  %s251_s2 = inlined_call_operand.hbm [shape: f32[1,8,128], index: 2, kind: output, shape index: {}]  }
   0x1   :  { %8 = vsyncpa [#allocation6], 0 }
   0x2   :  { %9 = vsyncpa [#allocation4], 0  ;;  %s193_s9 = smov [#allocation2]   ;;  %s121_s13 = scalar_lea.hbm %s249_s0, 256 }
   0x3   :  { %s21_s10 = sshll.u32 %s193_s9, 4  ;;  %p122_p0 = scmp.ne.s32.totalorder %s249_s0, %s121_s13  ;;  %s22_s10 = int_to_ptr.vmem [resolvable:$true] %s21_s10 }
   0x4   :  { %p125_p1 = scmp.lt.u32.totalorder %s121_s13, %s249_s0 }
   0x6   :  { %p127_p2 = pnand %p125_p1, %p122_p0 }
   0x8   :  { %130 = shalt.err (!%p127_p2)
}
   0x9   :  { %s131_s18 = scalar_lea.vmem %s22_s10, 256  ;;  %p136_p4 = scmp.lt.s32.totalorder %s22_s10, %s22_s10 }
   0xa   :  { %p132_p3 = scmp.ne.s32.totalorder %s22_s10, %s131_s18  ;;  %p137_p5 = scmp.lt.s32.totalorder %s131_s18, %s131_s18 }
   0xc   :  { %p138_p6 = por %p137_p5, %p136_p4 }
   0xe   :  { %p139_p7 = pnand %p138_p6, %p132_p3 }
  0x10   :  { %142 = shalt.err (!%p139_p7)
}
  0x11   :  { %s194_s19 = smov 128   ;;  %s195_s20 = smov 8  }
  0x12   :  { %27 = dma.hbm_to_vmem [thread:$0]  %s249_s0, 256, %s22_s10, [#allocation3], %s194_s19, %s194_s19, %s195_s20  }
  0x13   :  { %s196_s23 = smov [#allocation5]   ;;  %s143_s27 = scalar_lea.hbm %s250_s1, 256 }
  0x14   :  { %s39_s24 = sshll.u32 %s196_s23, 4  ;;  %p144_p8 = scmp.ne.s32.totalorder %s250_s1, %s143_s27  ;;  %s40_s24 = int_to_ptr.vmem [resolvable:$true] %s39_s24 }
  0x15   :  { %p147_p9 = scmp.lt.u32.totalorder %s143_s27, %s250_s1 }
  0x17   :  { %p149_p10 = pnand %p147_p9, %p144_p8 }
  0x19   :  { %152 = shalt.err (!%p149_p10)
}
  0x1a   :  { %s153_s4 = scalar_lea.vmem %s40_s24, 256  ;;  %p158_p12 = scmp.lt.s32.totalorder %s40_s24, %s40_s24 }
  0x1b   :  { %p154_p11 = scmp.ne.s32.totalorder %s40_s24, %s153_s4  ;;  %p159_p13 = scmp.lt.s32.totalorder %s153_s4, %s153_s4 }
  0x1d   :  { %p160_p0 = por %p159_p13, %p158_p12 }
  0x1f   :  { %p161_p1 = pnand %p160_p0, %p154_p11 }
  0x21   :  { %164 = shalt.err (!%p161_p1)
}
  0x22   :  { %45 = dma.hbm_to_vmem [thread:$0]  %s250_s1, 256, %s40_s24, [#allocation6], %s194_s19, %s194_s19, %s195_s20  }
  0x23   :  { %187 = dma.done.wait [#allocation3], 256  }
  0x24   :  { %188 = vsyncadd [#allocation3], 4294967040 }
  0x25   :  { %189 = dma.done.wait [#allocation6], 256  }
  0x26   :  { %190 = vsyncadd [#allocation6], 4294967040  ;;  %v67_v0 = vld [vmem:[#allocation5] sm:$0xff]  ;;  %v68_v1 = vld [vmem:[#allocation5 + $0x8] sm:$0xff]  ;;  %s197_s1 = smov [#allocation7]  }
  0x27   :  { %v71_v2 = vadd.f32 1.0, %v67_v0  ;;  %v72_v3 = vadd.f32 1.0, %v68_v1  ;;  %v65_v4 = vld [vmem:[#allocation2] sm:$0xff]  ;;  %v66_v5 = vld [vmem:[#allocation2 + $0x8] sm:$0xff]  ;;  %s93_s6 = sshll.u32 %s197_s1, 4  ;;  %s94_s6 = int_to_ptr.vmem [resolvable:$true] %s93_s6 }
  0x28   :  { %v69_v6 = vadd.f32 1.0, %v65_v4  ;;  %v70_v7 = vadd.f32 1.0, %v66_v5  ;;  %s165_s7 = scalar_lea.vmem %s94_s6, 128  ;;  %p170_p3 = scmp.lt.s32.totalorder %s94_s6, %s94_s6 }
  0x29   :  { %113 = vrcp.f32 %v71_v2  ;;  %p166_p2 = scmp.ne.s32.totalorder %s94_s6, %s165_s7  ;;  %p171_p4 = scmp.lt.s32.totalorder %s165_s7, %s165_s7 }
  0x2a   :  { %115 = vrcp.f32 %v72_v3 }
  0x2b   :  { %p172_p5 = por %p171_p4, %p170_p3 }
  0x2d   :  { %p173_p6 = pnand %p172_p5, %p166_p2 }
  0x33   :  { %v114_v8 = vpop.eup %113 }
  0x34   :  { %v116_v9 = vpop.eup %115  ;;  %v74_v10 = vmul.f32 %v114_v8, %v69_v6 }
  0x35   :  { %v76_v11 = vmul.f32 %v116_v9, %v70_v7 }
  0x36   :  { %117 = vlog2.f32 %v74_v10 }
  0x37   :  { %119 = vlog2.f32 %v76_v11 }
  0x40   :  { %v118_v12 = vpop.eup %117 }
  0x41   :  { %v120_v13 = vpop.eup %119  ;;  %v78_v14 = vmul.f32 0.6931472, %v118_v12 }
  0x42   :  { %v80_v15 = vmul.f32 0.6931472, %v120_v13 }
  0x43   :  { %v81_v16 = vmul.f32 %v78_v14, %v78_v14 }
  0x44   :  { %v82_v17 = vmul.f32 %v80_v15, %v80_v15 }
  0x46   :  { %v84_v18 = vadd.f32 %v82_v17, %v81_v16 }
  0x48   :  { %86 = vst [vmem:[#allocation7] sm:$0xff] %v84_v18 }
  0x49   :  { %176 = shalt.err (!%p173_p6)
}
  0x4a   :  { %s177_s10 = scalar_lea.hbm %s251_s2, 128 }
  0x4b   :  { %p178_p7 = scmp.ne.s32.totalorder %s251_s2, %s177_s10  ;;  %p181_p8 = scmp.lt.u32.totalorder %s177_s10, %s251_s2 }
  0x4d   :  { %p183_p9 = pnand %p181_p8, %p178_p7 }
  0x4f   :  { %186 = shalt.err (!%p183_p9)
}
  0x50   :  { %96 = dma.vmem_to_hbm [thread:$0]  %s94_s6, 128, %s251_s2, [#allocation4]  }
  0x51   :  { %191 = dma.done.wait [#allocation4], 128  }
  0x52   :  { %192 = vsyncadd [#allocation4], 4294967168 }
  0x53   :  { %100 = vsyncpa [#allocation3], 1 }
  0x54   :  { %101 = vsyncpa [#allocation6], 1 }
  0x55   :  { %102 = vsyncpa [#allocation4], 1 }

</bundles_post_ra>
